<compile_context>
chip_gen: v6e
topology: v6e:2x2x1
jax: 0.10.0
libtpu: 0.0.40
codegen_flags: <defaults>
</compile_context>

<pallas_src>
import jax
import jax.numpy as jnp
from jax import lax
from jax.experimental import pallas as pl
from jax.experimental.pallas import tpu as pltpu


# ----------------------------- Pallas kernel --------------------------------
def stage_kernel(de_ref, a_ref, r_ref, deg_ref, m_ref, wd_ref, o_ref):
    # out = A @ M_blockdiag + deg @ Wd_blockdiag + (delta*eta) * refnet(A)
    acc = jnp.dot(a_ref[...], m_ref[...], preferred_element_type=jnp.float32)
    acc = acc + jnp.dot(deg_ref[...], wd_ref[...],
                        preferred_element_type=jnp.float32)
    acc = acc + de_ref[0, 0] * r_ref[...].astype(jnp.float32)
    o_ref[...] = acc.astype(o_ref.dtype)


def _pick_vmem_limit():
    # Portable default 32 MiB (safe on v7x's 64 MiB physical VMEM); allow 64 MiB
    # where the chip has 128 MiB (v5e/v6e).  v5e's scoped default is only 16 MiB,
    # so an explicit limit is always set.
    cap = 64 * 1024 * 1024
    try:
        cap = int(getattr(pltpu.get_tpu_info(), "vmem_capacity_bytes", cap))
    except Exception:
        pass
    return max(32 * 1024 * 1024, min(64 * 1024 * 1024, cap // 2))


def stage_block_pallas(a_flat, r_flat, deg_flat, m_mat, wd_mat, delta_eta,
                       *, tile_rows=None):
    """out_flat = a_flat @ M + deg_flat @ Wd + (delta*eta) * r_flat.

    a_flat, r_flat : (N, C)   streamed (f32 or bf16)
    deg_flat       : (N, 2c)  streamed
    m_mat          : (C, C)   folded update matrix
    wd_mat         : (2c, C)  folded delta * recon matrix
    delta_eta      : scalar
    """
    n, cdim = a_flat.shape
    dtype = a_flat.dtype
    itemsize = jnp.dtype(dtype).itemsize
    sub = max(8, 32 // itemsize)            # sublane multiple: 8 f32 / 16 bf16 / 32 int8

    r_flat = r_flat.astype(dtype)
    deg_flat = deg_flat.astype(dtype)
    ddim = deg_flat.shape[1]

    # ---- lane packing: `pack` pixels side by side -> full 128-wide stores ----
    pack = max(1, 128 // cdim)
    lane = cdim * pack
    dlane = ddim * pack
    rem = n % pack
    if rem:  # tiny tail pad (< pack rows); ideally upstream emits N % pack == 0
        padn = pack - rem
        a_flat = jnp.pad(a_flat, ((0, padn), (0, 0)))
        r_flat = jnp.pad(r_flat, ((0, padn), (0, 0)))
        deg_flat = jnp.pad(deg_flat, ((0, padn), (0, 0)))
    rows = a_flat.shape[0] // pack
    a_p = a_flat.reshape(rows, lane)
    r_p = r_flat.reshape(rows, lane)
    deg_p = deg_flat.reshape(rows, dlane)

    # block-diagonal folded weights (pack copies); zeros are free: the kernel is
    # HBM-bound and the MXU has large slack.  Keep lane = 128 (v5e headroom).
    eye_p = jnp.eye(pack, dtype=jnp.float32)
    m_big = jnp.kron(eye_p, m_mat.astype(jnp.float32)).astype(dtype)
    wd_big = jnp.kron(eye_p, wd_mat.astype(jnp.float32)).astype(dtype)
    de = jnp.asarray(delta_eta, jnp.float32).reshape(1, 1)

    # ---- per-chip VMEM budget and default row tile ----
    vmem_limit = _pick_vmem_limit()
    if tile_rows is None:
        tile_rows = (8192 * 4) // itemsize            # ~8192 f32 / ~16384 bf16 rows
        if vmem_limit >= 64 * 1024 * 1024:
            tile_rows *= 2                            # v5e/v6e: 128 MiB physical VMEM

    # ---- row tile: multiple of `sub`, aim for >=2 grid steps (v7x 2 TCs);
    #      partial last block is handled by Pallas (no wrapper pad / slice). ----
    tile = min(int(tile_rows), pl.cdiv(pl.cdiv(rows, 2), sub) * sub)
    tile = max(sub, (tile // sub) * sub)
    if tile >= rows:
        tile = rows                                   # single full-extent block
    grid0 = pl.cdiv(rows, tile)
    if grid0 > 1 and grid0 % 2 == 1:                  # prefer even grid counts
        tile_even = max(sub, pl.cdiv(pl.cdiv(rows, grid0 + 1), sub) * sub)
        if tile_even < rows:
            tile, grid0 = tile_even, pl.cdiv(rows, tile_even)

    out_p = pl.pallas_call(
        stage_kernel,
        out_shape=jax.ShapeDtypeStruct((rows, lane), dtype),
        grid=(grid0,),
        in_specs=[
            pl.BlockSpec(memory_space=pltpu.MemorySpace.SMEM),   # delta*eta (1,1) f32
            pl.BlockSpec((tile, lane), lambda i: (i, 0)),        # packed A
            pl.BlockSpec((tile, lane), lambda i: (i, 0)),        # packed refnet(A)
            pl.BlockSpec((tile, dlane), lambda i: (i, 0)),       # packed degLF
            # constant weights: index_map (0,0) -> fetched once, stays resident
            # (double-buffer cost is only ~2*64 KiB, so pl.Buffered isn't needed)
            pl.BlockSpec((lane, lane), lambda i: (0, 0)),        # block-diag M
            pl.BlockSpec((dlane, lane), lambda i: (0, 0)),       # block-diag delta*R
        ],
        out_specs=pl.BlockSpec((tile, lane), lambda i: (i, 0)),
        compiler_params=pltpu.CompilerParams(
            dimension_semantics=("parallel",),                   # megacore-shardable
            vmem_limit_bytes=int(vmem_limit),
        ),
    )(de, a_p, r_p, deg_p, m_big, wd_big)

    out_flat = out_p.reshape(rows * pack, cdim)      # free contiguous reshape
    return out_flat[:n] if rem else out_flat


# ----------------------------- RefNet (glue) --------------------------------
# TODO(synk): RefNet's definition is not included in the provided snippet; it is
# approximated here in plain JAX (spatial-angular separable conv residual net)
# so StageBlock's own hot path (proj / recon / update) stays exact.
def refnet_apply(p, x):
    # x: (b, c, u, v, X, Y)
    b, c, u, v, xs_, ys_ = x.shape
    f = p["w_sp1"].shape[0]
    dn = ("NCHW", "OIHW", "NCHW")
    h = x.transpose(0, 2, 3, 1, 4, 5).reshape(b * u * v, c, xs_, ys_)
    h = lax.conv_general_dilated(h, p["w_sp1"], (1, 1), "SAME", dimension_numbers=dn)
    h = jax.nn.relu(h)
    h = h.reshape(b, u, v, f, xs_, ys_).transpose(0, 4, 5, 3, 1, 2)
    h = h.reshape(b * xs_ * ys_, f, u, v)
    h = lax.conv_general_dilated(h, p["w_ang"], (1, 1), "SAME", dimension_numbers=dn)
    h = jax.nn.relu(h)
    h = h.reshape(b, xs_, ys_, f, u, v).transpose(0, 4, 5, 3, 1, 2)
    h = h.reshape(b * u * v, f, xs_, ys_)
    h = lax.conv_general_dilated(h, p["w_sp2"], (1, 1), "SAME", dimension_numbers=dn)
    h = h.reshape(b, u, v, c, xs_, ys_).transpose(0, 3, 1, 2, 4, 5)
    return x + h


# --------------------------- weight folding (glue) ---------------------------
def build_matrices(w_proj, w_recon, c, u, v):
    uv = u * v
    # proj: Conv2d(u*v -> 2, k=1, no bias): meas[j,m] = sum_a W[m,a] * A[j,a]
    p4 = jnp.einsum("ij,ma->iajm", jnp.eye(c, dtype=w_proj.dtype), w_proj)
    proj_mat = p4.reshape(c * uv, c * 2)
    # recon: ConvTranspose2d(c, c, (u, v-1), no bias) on a (1, 2) input.
    we0 = jnp.pad(w_recon, ((0, 0), (0, 0), (0, 0), (0, 1)))   # input col 0
    we1 = jnp.pad(w_recon, ((0, 0), (0, 0), (0, 0), (1, 0)))   # input col 1
    w_eff = jnp.stack([we0, we1], axis=1)                      # (c, 2, c, u, v)
    recon_mat = w_eff.reshape(c * 2, c * u * v)
    return proj_mat, recon_mat, w_eff


# --------------------------- StageBlock.forward ------------------------------
def stage_block_forward(params, out_lastStage, degLF, originalLFSize,
                        *, stream_dtype=None, tile_rows=None):
    b, u, v, c, X, Y = originalLFSize
    N, uv = b * X * Y, u * v
    C = c * uv

    # RefNet runs in XLA (conv ops); only its output stream feeds the kernel.
    x6 = out_lastStage.reshape(b, X, Y, c, u, v).transpose(0, 3, 4, 5, 1, 2)
    r_flat = refnet_apply(params["refnet"], x6).transpose(0, 4, 5, 1, 2, 3).reshape(N, C)

    # Fold proj / recon / delta / eta into tiny weight-only XLA ops.
    proj_mat, recon_mat, _ = build_matrices(params["w_proj"], params["w_recon"], c, u, v)
    delta, eta = params["delta"], params["eta"]
    m_mat = (1.0 - delta * eta) * jnp.eye(C, dtype=jnp.float32) \
        - delta * (proj_mat @ recon_mat)
    wd_mat = delta * recon_mat

    a_flat = out_lastStage.reshape(N, C)
    deg_flat = degLF.reshape(N, 2 * c)
    if stream_dtype is not None:
        # In a bf16 deployment the producer (previous stage / refnet) should emit
        # bf16 directly; the explicit cast here is only for the demo.
        a_flat = a_flat.astype(stream_dtype)
        r_flat = r_flat.astype(stream_dtype)
        deg_flat = deg_flat.astype(stream_dtype)

    out_flat = stage_block_pallas(a_flat, r_flat, deg_flat, m_mat, wd_mat,
                                  delta * eta, tile_rows=tile_rows)
    return out_flat.reshape(N, c, u, v)


# --------------------------------- main --------------------------------------
if __name__ == "__main__":
    key = jax.random.PRNGKey(0)
    ks = jax.random.split(key, 10)

    # originalLFSize = (b, u, v, c, x, y); measurementNum = 2, recon kernel = (u, v-1)
    b, u, v, c, X, Y = 2, 4, 4, 2, 16, 15     # N = 480 (mult of pack=4), C = 32
    kh, kw = u, v - 1
    N, uv = b * X * Y, u * v
    C = c * uv

    out_lastStage = jax.random.normal(ks[0], (N, c, u, v), jnp.float32)
    degLF = jax.random.normal(ks[1], (N, c, 1, 2), jnp.float32)

    feat = 8
    params = {
        "w_proj": 0.1 * jax.random.normal(ks[2], (2, uv), jnp.float32),
        "w_recon": 0.1 * jax.random.normal(ks[3], (c, c, kh, kw), jnp.float32),
        "delta": jax.random.uniform(ks[4], (), jnp.float32),
        "eta": jax.random.uniform(ks[5], (), jnp.float32),
        "refnet": {
            "w_sp1": 0.1 * jax.random.normal(ks[6], (feat, c, 3, 3), jnp.float32),
            "w_ang": 0.1 * jax.random.normal(ks[7], (feat, feat, 3, 3), jnp.float32),
            "w_sp2": 0.1 * jax.random.normal(ks[8], (c, feat, 3, 3), jnp.float32),
        },
    }
    size = (b, u, v, c, X, Y)

    # ----- plain-JAX reference of the StageBlock update (PyTorch algebra) -----
    x6 = out_lastStage.reshape(b, X, Y, c, u, v).transpose(0, 3, 4, 5, 1, 2)
    r4 = refnet_apply(params["refnet"], x6).transpose(0, 4, 5, 1, 2, 3).reshape(N, c, u, v)
    _, _, w_eff = build_matrices(params["w_proj"], params["w_recon"], c, u, v)
    meas = jnp.einsum("nca,ma->ncm", out_lastStage.reshape(N, c, uv), params["w_proj"])
    d = meas - degLF.reshape(N, c, 2)
    err1 = jnp.einsum("ncs,csopq->nopq", d, w_eff)
    err2 = out_lastStage - r4
    ref = out_lastStage - params["delta"] * (err1 + params["eta"] * err2)

    # ----- fused Pallas path, f32 streams: exact algebra check ---------------
    out_f32 = stage_block_forward(params, out_lastStage, degLF, size)
    out_f32 = jax.block_until_ready(out_f32)
    assert jnp.allclose(out_f32, ref, atol=1e-4, rtol=1e-4), "f32 mismatch vs reference"

    # ----- fused Pallas path, bf16 streams (recommended deployment dtype) ----
    out_b16 = stage_block_forward(params, out_lastStage, degLF, size,
                                  stream_dtype=jnp.bfloat16)
    out_b16 = jax.block_until_ready(out_b16).astype(jnp.float32)
    assert jnp.allclose(out_b16, ref, atol=1e-1, rtol=1e-1), "bf16 mismatch vs reference"

    print("KERNEL_OK")
</pallas_src>

<mosaic_0001>
module attributes {stable_mosaic.version = 11 : i64} {
  func.func @stage_kernel(%arg0: i32, %arg1: memref<1x1xf32, #tpu.memory_space<smem>>, %arg2: memref<64x128xf32, #tpu.memory_space<vmem>>, %arg3: memref<64x128xf32, #tpu.memory_space<vmem>>, %arg4: memref<64x16xf32, #tpu.memory_space<vmem>>, %arg5: memref<128x128xf32, #tpu.memory_space<vmem>>, %arg6: memref<16x128xf32, #tpu.memory_space<vmem>>, %arg7: memref<64x128xf32, #tpu.memory_space<vmem>>) attributes {dimension_semantics = [#tpu.dimension_semantics<parallel>], iteration_bounds = array<i64: 2>, scalar_prefetch = 0 : i64, scratch_operands = 0 : i64, tpu.core_type = #tpu.core_type<tc>, window_params = [{transform_indices = @transform_0, window_bounds = array<i64: 1, 1>}, {transform_indices = @transform_1, window_bounds = array<i64: 64, 128>}, {transform_indices = @transform_2, window_bounds = array<i64: 64, 128>}, {transform_indices = @transform_3, window_bounds = array<i64: 64, 16>}, {pipeline_mode = #tpu.pipeline_mode<synchronous>, transform_indices = @transform_4, window_bounds = array<i64: 128, 128>}, {pipeline_mode = #tpu.pipeline_mode<synchronous>, transform_indices = @transform_5, window_bounds = array<i64: 16, 128>}, {transform_indices = @transform_6, window_bounds = array<i64: 64, 128>}]} {
    %c0 = arith.constant 0 : index
    %c0_0 = arith.constant 0 : index
    %0 = vector.load %arg2[%c0, %c0_0] : memref<64x128xf32, #tpu.memory_space<vmem>>, vector<64x128xf32>
    %c0_1 = arith.constant 0 : index
    %c0_2 = arith.constant 0 : index
    %1 = vector.load %arg5[%c0_1, %c0_2] : memref<128x128xf32, #tpu.memory_space<vmem>>, vector<128x128xf32>
    %cst = arith.constant dense<0.000000e+00> : vector<64x128xf32>
    %2 = tpu.matmul %0, %1, %cst {dimension_numbers = #tpu.dot_dimension_numbers<[1], [0], [0], [1], [0, 0, 1, 1], [], []>} : vector<64x128xf32>, vector<128x128xf32>, vector<64x128xf32> -> vector<64x128xf32>
    %c0_3 = arith.constant 0 : index
    %c0_4 = arith.constant 0 : index
    %3 = vector.load %arg4[%c0_3, %c0_4] : memref<64x16xf32, #tpu.memory_space<vmem>>, vector<64x16xf32>
    %c0_5 = arith.constant 0 : index
    %c0_6 = arith.constant 0 : index
    %4 = vector.load %arg6[%c0_5, %c0_6] : memref<16x128xf32, #tpu.memory_space<vmem>>, vector<16x128xf32>
    %cst_7 = arith.constant dense<0.000000e+00> : vector<64x128xf32>
    %5 = tpu.matmul %3, %4, %cst_7 {dimension_numbers = #tpu.dot_dimension_numbers<[1], [0], [0], [1], [0, 0, 1, 1], [], []>} : vector<64x16xf32>, vector<16x128xf32>, vector<64x128xf32> -> vector<64x128xf32>
    %6 = arith.addf %2, %5 : vector<64x128xf32>
    %c0_8 = arith.constant 0 : index
    %c0_9 = arith.constant 0 : index
    %7 = memref.load %arg1[%c0_8, %c0_9] : memref<1x1xf32, #tpu.memory_space<smem>>
    %c0_10 = arith.constant 0 : index
    %c0_11 = arith.constant 0 : index
    %8 = vector.load %arg3[%c0_10, %c0_11] : memref<64x128xf32, #tpu.memory_space<vmem>>, vector<64x128xf32>
    %9 = vector.broadcast %7 : f32 to vector<64x128xf32>
    %10 = arith.mulf %9, %8 : vector<64x128xf32>
    %11 = arith.addf %6, %10 : vector<64x128xf32>
    %c0_12 = arith.constant 0 : index
    %c0_13 = arith.constant 0 : index
    %12 = vector.load %arg7[%c0_12, %c0_13] : memref<64x128xf32, #tpu.memory_space<vmem>>, vector<64x128xf32>
    tpu.vector_store %arg7[%c0_12, %c0_13], %11 {strides = array<i32>} : memref<64x128xf32, #tpu.memory_space<vmem>>, vector<64x128xf32>,
    return
  }
  func.func @transform_0(%arg0: i32) -> (i32, i32) {
    %c0_i32 = arith.constant 0 : i32
    %c0_i32_0 = arith.constant 0 : i32
    %c0_i32_1 = arith.constant 0 : i32
    return %c0_i32, %c0_i32_0 : i32, i32
  }
  func.func @transform_1(%arg0: i32) -> (i32, i32) {
    %c0_i32 = arith.constant 0 : i32
    %c0_i32_0 = arith.constant 0 : i32
    return %arg0, %c0_i32 : i32, i32
  }
  func.func @transform_2(%arg0: i32) -> (i32, i32) {
    %c0_i32 = arith.constant 0 : i32
    %c0_i32_0 = arith.constant 0 : i32
    return %arg0, %c0_i32 : i32, i32
  }
  func.func @transform_3(%arg0: i32) -> (i32, i32) {
    %c0_i32 = arith.constant 0 : i32
    %c0_i32_0 = arith.constant 0 : i32
    return %arg0, %c0_i32 : i32, i32
  }
  func.func @transform_4(%arg0: i32) -> (i32, i32) {
    %c0_i32 = arith.constant 0 : i32
    %c0_i32_0 = arith.constant 0 : i32
    %c0_i32_1 = arith.constant 0 : i32
    return %c0_i32, %c0_i32_0 : i32, i32
  }
  func.func @transform_5(%arg0: i32) -> (i32, i32) {
    %c0_i32 = arith.constant 0 : i32
    %c0_i32_0 = arith.constant 0 : i32
    %c0_i32_1 = arith.constant 0 : i32
    return %c0_i32, %c0_i32_0 : i32, i32
  }
  func.func @transform_6(%arg0: i32) -> (i32, i32) {
    %c0_i32 = arith.constant 0 : i32
    %c0_i32_0 = arith.constant 0 : i32
    return %arg0, %c0_i32 : i32, i32
  }
}

</mosaic_0001>

<bundles_post_ra>
// kernel: tpu_custom_call.1
= control target key start
LH: loop header
LB: loop body
LE: loop exit
PB: predicated region body
PF: predicated region fallthrough
CT: control target
= control target key end

     0   :  { %s1533_s0 = inlined_call_operand.<no memory space> [shape: f32[1,1], index: 0, kind: input, shape index: {}]   ;;  %s1534_s1 = inlined_call_operand.hbm [shape: f32[120,128], index: 1, kind: input, shape index: {}]   ;;  %s1535_s2 = inlined_call_operand.hbm [shape: f32[120,128], index: 2, kind: input, shape index: {}]   ;;  %s1536_s3 = inlined_call_operand.vmem [shape: f32[120,16], index: 3, kind: input, shape index: {}]   ;;  %s1537_s4 = inlined_call_operand.vmem [shape: f32[128,128], index: 4, kind: input, shape index: {}]   ;;  %s1538_s5 = inlined_call_operand.vmem [shape: f32[16,128], index: 5, kind: input, shape index: {}]   ;;  %s1539_s6 = inlined_call_operand.hbm [shape: f32[120,128], index: 6, kind: output, shape index: {}]  }
   0x1   :  { %11 = sst [smem:[#allocation2]] %s1533_s0 }
   0x2   :  { %12 = vsyncpa [#allocation4], 0 }
   0x3   :  { %14 = vsyncpa [#allocation4 + $0x1], 0 }
   0x4   :  { %15 = vsyncpa [#allocation7], 0 }
   0x5   :  { %17 = vsyncpa [#allocation7 + $0x1], 0 }
   0x6   :  { %18 = vsyncpa [#allocation5], 0 }
   0x7   :  { %20 = vsyncpa [#allocation5 + $0x1], 0  ;;  %s1195_s23 = smov 0   ;;  %s1197_s24 = smov 0  }
   0x8   :  { %s1199_s25 = smov 0   ;;  %s1201_s26 = smov 0  }
   0x9 LB: > { %s1216_s0 = sadd.s32 4294967295, %s1146_s26   ;;  %s811_s27 = sadd.s32 4294967294, %s1146_s26   ;;  %s1146_s26 = sphi %s1201_s26, %s1551_s26   ;;  %s1142_s25 = sphi %s1199_s25, %s1550_s25   ;;  %s1138_s24 = sphi %s1197_s24, %s1549_s24   ;;  %s1134_s23 = sphi %s1195_s23, %s1548_s23  }
   0xa   : > { %s1220_s28 = sadd.s32 1, %s1146_s26   ;;  %s54_s29 = sadd.s32 1, %s1142_s25 }
   0xb   : > { %s51_s30 = ssub.s32 %s1146_s26, %s1220_s28  ;;  %p61_p0 = scmp.ne.s32.totalorder %s1142_s25, %s1138_s24 }
   0xc   : > { %p52_p1 = scmp.eq.s32.totalorder %s51_s30, 0  ;;  %p62_p2 = scmp.eq.s32.totalorder %s1146_s26, 0 }
   0xd   : > { %p67_p3 = scmp.ne.s32.totalorder %s1138_s24, %s1134_s23  ;;  %p68_p4 = scmp.eq.s32.totalorder %s1216_s0, 0 }
   0xe   : > { %s1232_s7 = scalar_select %p52_p1, %s1142_s25, %s54_s29  }
   0xf   : > { %p1234_p5 = por %p62_p2, %p61_p0  ;;  %p1238_p6 = por %p68_p4, %p67_p3 }
  0x10   : > { %p185_p7 = scmp.eq.s32.totalorder %s1216_s0, 1  ;;  %p191_p8 = scmp.eq.s32.totalorder %s811_s27, 1 }
  0x11   : > { %p1540_p11 = scmp.ge.s32.totalorder %s1146_s26, 2 }
  0x12   : > { %p1243_p9 = por %p185_p7, %p61_p0  ;;  %p1247_p10 = por %p191_p8, %p67_p3 }
  0x13   : > { %216 = sbr.rel (%p1540_p11) target bundleno = 88 (0x58), region = 28 }
  0x14   : > { %s1543_s10 = scalar_select %p1243_p9, 1, 0 }
  0x15   : > { %s1544_s11 = scalar_select %p1247_p10, 1, 0 }
  0x18   : > { %219 = sbr.rel (!%p1234_p5) target bundleno = 56 (0x38), region = 32  ;;  %s220_s12 = sand.u32 (%p1234_p5), 1, %s1142_s25  }
  0x19   : > { %s815_s13 = sshll.u32 (%p1234_p5), %s1146_s26, 3  ;;  %s814_s14 = sshll.u32 (%p1234_p5), %s220_s12, 6 }
  0x1a   : > { %s226_s15 = ssub.s32 (%p1234_p5), 15, %s815_s13  ;;  %s1261_s18 = scalar_lea.sflag (%p1234_p5), [#allocation4], %s220_s12 }
  0x1b   : > { %p227_p12 = scmp.lt.s32.totalorder (%p1234_p5), %s226_s15, 8  ;;  %s224_s19 = scalar_lea.vmem (%p1234_p5), [#allocation3], %s814_s14 }
  0x1d   : > { %s1553_s15 = smov (!%p227_p12, %s226_s15), 8 }
  0x1e   : > { %s1258_s16 = sshll.u32 %s1553_s15, 7 }
  0x1f   : > { %s231_s17 = ssub.s32 1024, %s1258_s16 }
  0x20   : > { %232 = vsyncadd %s1261_s18, %s231_s17  ;;  %p817_p13 = scmp.ne.s32.totalorder %s1258_s16, 0  ;;  %s851_s20 = sshll.u32 %s1146_s26, 10 }
  0x21   : > { %s1269_s27 = scalar_lea.hbm %s1534_s1, %s851_s20  ;;  %s237_s29 = sshll.u32 %s224_s19, 4  ;;  %s1271_s29 = int_to_ptr.vmem [resolvable:$true] %s237_s29 }
  0x22   : > { %s1026_s30 = scalar_lea.hbm %s1269_s27, %s1258_s16  ;;  %s1030_s14 = scalar_lea.hbm %s1534_s1, 1920 }
  0x23   : > { %p1027_p0 = scmp.ne.s32.totalorder %s1269_s27, %s1026_s30  ;;  %p1031_p3 = scmp.lt.s32.totalorder %s1269_s27, %s1534_s1 }
  0x24   : > { %p1032_p4 = scmp.lt.s32.totalorder %s1030_s14, %s1026_s30 }
  0x25   : > { %p1028_p1 = pnand %p1027_p0, %p817_p13 }
  0x26   : > { %p1033_p7 = por %p1032_p4, %p1031_p3 }
  0x27   : > { %p1029_p2 = pneg %p1028_p1 }
  0x29   : > { %p1034_p8 = pnand %p1033_p7, %p1029_p2 }
  0x2b   : > { %1037 = shalt.err (!%p1034_p8)
}
  0x2c   : > { %s1038_s19 = scalar_lea.vmem %s1271_s29, %s1258_s16  ;;  %s1148_s20 = smov [#allocation3]  }
  0x2d   : > { %p1039_p12 = scmp.ne.s32.totalorder %s1271_s29, %s1038_s19  ;;  %s1042_s21 = sshll.u32 %s1148_s20, 4  ;;  %s1043_s21 = int_to_ptr.vmem [resolvable:$false] %s1042_s21 }
  0x2e   : > { %s1044_s22 = scalar_lea.vmem %s1043_s21, 2048  ;;  %p1045_p11 = scmp.lt.s32.totalorder %s1271_s29, %s1043_s21 }
  0x2f   : > { %p1040_p0 = pnand %p1039_p12, %p817_p13  ;;  %p1046_p10 = scmp.lt.s32.totalorder %s1044_s22, %s1038_s19 }
  0x31   : > { %p1041_p1 = pneg %p1040_p0  ;;  %p1047_p9 = por %p1046_p10, %p1045_p11 }
  0x33   : > { %p1048_p3 = pnand %p1047_p9, %p1041_p1 }
  0x35   : > { %1051 = shalt.err (!%p1048_p3)
}
  0x36   : > { %s1149_s30 = smov 128   ;;  %s1150_s12 = smov 8  }
  0x37   : > { %243 = dma.hbm_to_vmem [thread:$0]  (%p817_p13), %s1269_s27, %s1258_s16, %s1271_s29, %s1261_s18, %s1149_s30, %s1149_s30, %s1150_s12  }
  0x38 PF: > { %246 = sbr.rel (!%p1234_p5) target bundleno = 88 (0x58), region = 36  ;;  %s247_s13 = sand.u32 (%p1234_p5), 1, %s1142_s25  }
  0x39   : > { %s822_s14 = sshll.u32 (%p1234_p5), %s1146_s26, 3  ;;  %s821_s15 = sshll.u32 (%p1234_p5), %s247_s13, 6 }
  0x3a   : > { %s253_s17 = ssub.s32 (%p1234_p5), 15, %s822_s14  ;;  %s1304_s21 = scalar_lea.sflag (%p1234_p5), [#allocation7], %s247_s13 }
  0x3b   : > { %p254_p9 = scmp.lt.s32.totalorder (%p1234_p5), %s253_s17, 8  ;;  %s251_s16 = scalar_lea.vmem (%p1234_p5), [#allocation6], %s821_s15 }
  0x3d   : > { %s1555_s17 = smov (!%p254_p9, %s253_s17), 8 }
  0x3e   : > { %s1301_s19 = sshll.u32 %s1555_s17, 7 }
  0x3f   : > { %s258_s20 = ssub.s32 1024, %s1301_s19 }
  0x40   : > { %259 = vsyncadd %s1304_s21, %s258_s20  ;;  %p824_p5 = scmp.ne.s32.totalorder %s1301_s19, 0  ;;  %s852_s8 = sshll.u32 %s1146_s26, 10 }
  0x41   : > { %s1312_s29 = scalar_lea.hbm %s1535_s2, %s852_s8  ;;  %s264_s22 = sshll.u32 %s251_s16, 4  ;;  %s1314_s22 = int_to_ptr.vmem [resolvable:$true] %s264_s22 }
  0x42   : > { %s1052_s30 = scalar_lea.hbm %s1312_s29, %s1301_s19  ;;  %s1056_s14 = scalar_lea.hbm %s1535_s2, 1920 }
  0x43   : > { %p1053_p10 = scmp.ne.s32.totalorder %s1312_s29, %s1052_s30  ;;  %p1057_p2 = scmp.lt.s32.totalorder %s1312_s29, %s1535_s2 }
  0x44   : > { %p1058_p4 = scmp.lt.s32.totalorder %s1056_s14, %s1052_s30 }
  0x45   : > { %p1054_p11 = pnand %p1053_p10, %p824_p5 }
  0x46   : > { %p1059_p7 = por %p1058_p4, %p1057_p2 }
  0x47   : > { %p1055_p13 = pneg %p1054_p11 }
  0x49   : > { %p1060_p8 = pnand %p1059_p7, %p1055_p13 }
  0x4b   : > { %1063 = shalt.err (!%p1060_p8)
}
  0x4c   : > { %s1064_s20 = scalar_lea.vmem %s1314_s22, %s1301_s19  ;;  %s1151_s16 = smov [#allocation6]  }
  0x4d   : > { %p1065_p12 = scmp.ne.s32.totalorder %s1314_s22, %s1064_s20  ;;  %s1068_s8 = sshll.u32 %s1151_s16, 4  ;;  %s1069_s8 = int_to_ptr.vmem [resolvable:$false] %s1068_s8 }
  0x4e   : > { %s1070_s18 = scalar_lea.vmem %s1069_s8, 2048  ;;  %p1071_p3 = scmp.lt.s32.totalorder %s1314_s22, %s1069_s8 }
  0x4f   : > { %p1066_p0 = pnand %p1065_p12, %p824_p5  ;;  %p1072_p9 = scmp.lt.s32.totalorder %s1070_s18, %s1064_s20 }
  0x51   : > { %p1067_p1 = pneg %p1066_p0  ;;  %p1073_p10 = por %p1072_p9, %p1071_p3 }
  0x53   : > { %p1074_p11 = pnand %p1073_p10, %p1067_p1 }
  0x55   : > { %1077 = shalt.err (!%p1074_p11)
}
  0x56   : > { %s1152_s27 = smov 128   ;;  %s1153_s30 = smov 8  }
  0x57   : > { %270 = dma.hbm_to_vmem [thread:$0]  (%p824_p5), %s1312_s29, %s1301_s19, %s1314_s22, %s1304_s21, %s1152_s27, %s1152_s27, %s1153_s30  }
  0x58 PF: > { %p828_p13 = scmp.ge.s32.totalorder %s1146_s26, 1  ;;  %p289_p2 = scmp.lt.s32.totalorder %s1146_s26, 3 }
  0x5a   : > { %p290_p4 = pnand %p828_p13, %p289_p2 }
  0x5b   : > { %s1343_s12 = sand.u32 (!%p290_p4), 1, %s1138_s24  }
  0x5c   : > { %293 = sbr.rel (%p290_p4) target bundleno = 373 (0x175), region = 44  ;;  %s1346_s13 = sshll.u32 (!%p290_p4), %s1343_s12, 6 }
  0x5d   : > { %s296_s14 = scalar_lea.sflag (!%p290_p4), [#allocation4], %s1343_s12  ;;  %s1350_s15 = scalar_lea.vmem (!%p290_p4), [#allocation3], %s1346_s13 }
  0x61   : > { %1121 = dma.done.wait (%p1238_p6), %s296_s14, 1024  }
  0x62   : > { %1123 = vsyncadd (%p1238_p6), %s296_s14, 4294966272  ;;  %s305_s19 = scalar_lea.sflag [#allocation7], %s1343_s12  ;;  %s1358_s21 = scalar_lea.vmem [#allocation6], %s1346_s13 }
  0x63   : > { %1125 = dma.done.wait (%p1238_p6), %s305_s19, 1024  }
  0x64   : > { %1127 = vsyncadd (%p1238_p6), %s305_s19, 4294966272  ;;  %s1365_s29 = sshll.u32 %s1216_s0, 3  ;;  %v413_v0 = vld [vmem:[%s1538_s5 + $0x8] sm:$0xff]  ;;  %v403_v1 = vld [vmem:[%s1537_s4 + $0x78] sm:$0xff]  ;;  %vm414_vm0 = vcmask 130048   ;;  %p1545_p6 = scmp.ne.s32.totalorder %s1543_s10, 0 }
  0x65   : > { %p366_p5 = scmp.lt.s32.totalorder %s1365_s29, 14  ;;  %v412_v2 = vld [vmem:[%s1538_s5] sm:$0xff]  ;;  %888 = vmatprep.subr.mxu0 %v413_v0  ;;  %948 = vmatprep.subr.mxu1 %v403_v1  ;;  %v402_v3 = vld [vmem:[%s1537_s4 + $0x70] sm:$0xff]  ;;  %v401_v5 = vld [vmem:[%s1537_s4 + $0x68] sm:$0xff] }
  0x66   : > { %889 = vmatpush3.msra.mxu0 %v413_v0  ;;  %964 = vmatpush3.msra.mxu1 %v403_v1  ;;  %v400_v7 = vld [vmem:[%s1537_s4 + $0x60] sm:$0xff]  ;;  %v399_v8 = vld [vmem:[%s1537_s4 + $0x58] sm:$0xff]  ;;  %v398_v9 = vld [vmem:[%s1537_s4 + $0x50] sm:$0xff] }
  0x67   : > { %s367_s22 = scalar_select %p366_p5, %s1365_s29, 14  ;;  %890 = vmatprep.subr.mxu0 %v412_v2  ;;  %949 = vmatprep.subr.mxu1 %v402_v3  ;;  %v397_v10 = vld [vmem:[%s1537_s4 + $0x48] sm:$0xff]  ;;  %v396_v11 = vld [vmem:[%s1537_s4 + $0x40] sm:$0xff]  ;;  %v395_v12 = vld [vmem:[%s1537_s4 + $0x38] sm:$0xff] }
  0x68   : > { %891 = vmatpush3.msra.mxu0 %v412_v2  ;;  %965 = vmatpush3.msra.mxu1 %v402_v3  ;;  %v394_v13 = vld [vmem:[%s1537_s4 + $0x30] sm:$0xff]  ;;  %v393_v14 = vld [vmem:[%s1537_s4 + $0x28] sm:$0xff]  ;;  %v392_v15 = vld [vmem:[%s1537_s4 + $0x20] sm:$0xff] }
  0x69   : > { %s833_s17 = sshll.u32 %s367_s22, 3  ;;  %904 = vmatprep.subr.mxu0 %v403_v1  ;;  %950 = vmatprep.subr.mxu1 %v401_v5  ;;  %v391_v18 = vld [vmem:[%s1537_s4 + $0x18] sm:$0xff]  ;;  %v390_v19 = vld [vmem:[%s1537_s4 + $0x10] sm:$0xff]  ;;  %v389_v22 = vld [vmem:[%s1537_s4 + $0x8] sm:$0xff] }
  0x6a   : > { %s1372_s8 = scalar_lea.vmem %s1536_s3, %s833_s17  ;;  %966 = vmatpush3.msra.mxu1 %v401_v5  ;;  %v388_v23 = vld [vmem:[%s1537_s4] sm:$0xff]  ;;  %v382_v25 = vld [vmem:[%s1350_s15 + $0x10] sm:$0xff]  ;;  %v383_v27 = vld [vmem:[%s1350_s15 + $0x18] sm:$0xff] }
  0x6b   : > { %v404_v4 = vld [vmem:[%s1372_s8] sm:$0xff]  ;;  %v405_v6 = vld [vmem:[%s1372_s8 + $0x8] sm:$0xff]  ;;  %951 = vmatprep.subr.mxu1 %v400_v7  ;;  %v406_v16 = vld [vmem:[%s1372_s8 + $0x10] sm:$0xff]  ;;  %939 = vmatprep.mubr.f32.mxu1 %v382_v25 }
  0x6c   : > { %892 = vmatprep.mubr.msk.f32.mxu0 %vm414_vm0, %v404_v4  ;;  %967 = vmatpush3.msra.mxu1 %v400_v7  ;;  %v407_v17 = vld [vmem:[%s1372_s8 + $0x18] sm:$0xff]  ;;  %v408_v20 = vld [vmem:[%s1372_s8 + $0x20] sm:$0xff]  ;;  %v409_v21 = vld [vmem:[%s1372_s8 + $0x28] sm:$0xff] }
  0x6d   : > { %893 = vmatmul.mubr.msk.f32.vlgmr.msra.gmra.mxu0 %vm414_vm0, %v405_v6  ;;  %952 = vmatprep.subr.mxu1 %v399_v8  ;;  %v410_v24 = vld [vmem:[%s1372_s8 + $0x30] sm:$0xff]  ;;  %v411_v26 = vld [vmem:[%s1372_s8 + $0x38] sm:$0xff]  ;;  %v380_v28 = vld [vmem:[%s1350_s15] sm:$0xff]  ;;  %s649_s8 = sld [smem:[#allocation2]] }
  0x6e   : > { %905 = vmatpush3.msra.mxu0 %v403_v1  ;;  %968 = vmatpush3.msra.mxu1 %v399_v8  ;;  %v384_v29 = vld [vmem:[%s1350_s15 + $0x20] sm:$0xff]  ;;  %v381_v30 = vld [vmem:[%s1350_s15 + $0x8] sm:$0xff]  ;;  %v386_v32 = vld [vmem:[%s1350_s15 + $0x30] sm:$0xff] }
  0x6f   : > { %906 = vmatprep.subr.mxu0 %v402_v3  ;;  %953 = vmatprep.subr.mxu1 %v398_v9  ;;  %v385_v31 = vld [vmem:[%s1350_s15 + $0x28] sm:$0xff]  ;;  %v387_v33 = vld [vmem:[%s1350_s15 + $0x38] sm:$0xff]  ;;  %v652_v42 = vld [vmem:[%s1358_s21 + $0x10] sm:$0xff]  ;;  %s1460_s15 = scalar_lea.vmem [#allocation8], %s1346_s13  ;;  %s684_s13 = scalar_lea.sflag [#allocation5], %s1343_s12 }
  0x70   : > { %907 = vmatpush3.msra.mxu0 %v402_v3  ;;  %969 = vmatpush3.msra.mxu1 %v398_v9  ;;  %v653_v40 = vld [vmem:[%s1358_s21 + $0x18] sm:$0xff]  ;;  %v651_v45 = vld [vmem:[%s1358_s21 + $0x8] sm:$0xff]  ;;  %v650_v51 = vld [vmem:[%s1358_s21] sm:$0xff] }
  0x71   : > { %908 = vmatprep.subr.mxu0 %v401_v5  ;;  %954 = vmatprep.subr.mxu1 %v397_v10  ;;  %v655_v47 = vld [vmem:[%s1358_s21 + $0x28] sm:$0xff]  ;;  %v654_v54 = vld [vmem:[%s1358_s21 + $0x20] sm:$0xff]  ;;  %v657_v62 = vld [vmem:[%s1358_s21 + $0x38] sm:$0xff] }
  0x72   : > { %909 = vmatpush3.msra.mxu0 %v401_v5  ;;  %970 = vmatpush3.msra.mxu1 %v397_v10  ;;  %v656_v6 = vld [vmem:[%s1358_s21 + $0x30] sm:$0xff]  ;;  %s692_s21 = ssub.s32 (%p1545_p6), 15, %s1365_s29 }
  0x73   : > { %910 = vmatprep.subr.mxu0 %v400_v7  ;;  %955 = vmatprep.subr.mxu1 %v396_v11  ;;  %v658_v41 = vstv %s649_s8  ;;  %p693_p7 = scmp.lt.s32.totalorder (%p1545_p6), %s692_s21, 8 }
  0x74   : > { %911 = vmatpush3.msra.mxu0 %v400_v7  ;;  %971 = vmatpush3.msra.mxu1 %v396_v11  ;;  %v662_v44 = vmul.f32 %v658_v41, %v653_v40  ;;  %v661_v50 = vmul.f32 %v658_v41, %v652_v42  ;;  %v660_v53 = vmul.f32 %v658_v41, %v651_v45 }
  0x75   : > { %912 = vmatprep.subr.mxu0 %v399_v8  ;;  %956 = vmatprep.subr.mxu1 %v395_v12  ;;  %v664_v58 = vmul.f32 %v658_v41, %v655_v47  ;;  %v659_v61 = vmul.f32 %v658_v41, %v650_v51  ;;  %v663_v2 = vmul.f32 %v658_v41, %v654_v54 }
  0x76   : > { %913 = vmatpush3.msra.mxu0 %v399_v8  ;;  %972 = vmatpush3.msra.mxu1 %v395_v12 }
  0x77   : > { %914 = vmatprep.subr.mxu0 %v398_v9  ;;  %957 = vmatprep.subr.mxu1 %v394_v13 }
  0x78   : > { %915 = vmatpush3.msra.mxu0 %v398_v9  ;;  %973 = vmatpush3.msra.mxu1 %v394_v13  ;;  %v666_v9 = vmul.f32 %v658_v41, %v657_v62 }
  0x79   : > { %916 = vmatprep.subr.mxu0 %v397_v10  ;;  %958 = vmatprep.subr.mxu1 %v393_v14 }
  0x7a   : > { %917 = vmatpush3.msra.mxu0 %v397_v10  ;;  %974 = vmatpush3.msra.mxu1 %v393_v14 }
  0x7b   : > { %918 = vmatprep.subr.mxu0 %v396_v11  ;;  %959 = vmatprep.subr.mxu1 %v392_v15 }
  0x7c   : > { %919 = vmatpush3.msra.mxu0 %v396_v11  ;;  %895 = vmatprep.mubr.msk.f32.mxu0 %vm414_vm0, %v406_v16 }
  0x7d   : > { %920 = vmatprep.subr.mxu0 %v395_v12  ;;  %975 = vmatpush3.msra.mxu1 %v392_v15 }
  0x7e   : > { %921 = vmatpush3.msra.mxu0 %v395_v12  ;;  %960 = vmatprep.subr.mxu1 %v391_v18 }
  0x7f   : > { %922 = vmatprep.subr.mxu0 %v394_v13  ;;  %896 = vmatmul.mubr.msk.f32.gmra.mxu0 %vm414_vm0, %v407_v17 }
  0x80   : > { %923 = vmatpush3.msra.mxu0 %v394_v13  ;;  %976 = vmatpush3.msra.mxu1 %v391_v18 }
  0x81   : > { %924 = vmatprep.subr.mxu0 %v393_v14  ;;  %961 = vmatprep.subr.mxu1 %v390_v19 }
  0x82   : > { %925 = vmatpush3.msra.mxu0 %v393_v14  ;;  %898 = vmatprep.mubr.msk.f32.mxu0 %vm414_vm0, %v408_v20  ;;  %v665_v14 = vmul.f32 %v658_v41, %v656_v6 }
  0x83   : > { %926 = vmatprep.subr.mxu0 %v392_v15  ;;  %977 = vmatpush3.msra.mxu1 %v390_v19 }
  0x84   : > { %927 = vmatpush3.msra.mxu0 %v392_v15  ;;  %962 = vmatprep.subr.mxu1 %v389_v22 }
  0x85   : > { %899 = vmatmul.mubr.msk.f32.gmra.mxu0 %vm414_vm0, %v409_v21  ;;  %928 = vmatprep.subr.mxu0 %v391_v18 }
  0x86   : > { %929 = vmatpush3.msra.mxu0 %v391_v18  ;;  %978 = vmatpush3.msra.mxu1 %v389_v22 }
  0x87   : > { %930 = vmatprep.subr.mxu0 %v390_v19  ;;  %963 = vmatprep.subr.mxu1 %v388_v23 }
  0x88   : > { %901 = vmatprep.mubr.msk.f32.mxu0 %vm414_vm0, %v410_v24  ;;  %931 = vmatpush3.msra.mxu0 %v390_v19 }
  0x89   : > { %979 = vmatpush3.msra.mxu1 %v388_v23  ;;  %902 = vmatmul.mubr.msk.f32.gmra.mxu0 %vm414_vm0, %v411_v26 }
  0x8a   : > { %932 = vmatprep.subr.mxu0 %v389_v22  ;;  %940 = vmatmul.mubr.f32.vlgmr.msra.gmra.mxu1 %v383_v27 }
  0x8b   : > { %933 = vmatpush3.msra.mxu0 %v389_v22  ;;  %936 = vmatprep.mubr.f32.mxu0 %v380_v28 }
  0x8c   : > { %934 = vmatprep.subr.mxu0 %v388_v23  ;;  %942 = vmatprep.mubr.f32.mxu1 %v384_v29 }
  0x8d   : > { %935 = vmatpush3.msra.mxu0 %v388_v23 }
  0x8e   : > { %937 = vmatmul.mubr.f32.vlgmr.msra.gmra.mxu0 %v381_v30  ;;  %943 = vmatmul.mubr.f32.gmra.mxu1 %v385_v31 }
  0x8f   : > { %945 = vmatprep.mubr.f32.mxu1 %v386_v32 }
  0x92   : > { %946 = vmatmul.mubr.f32.gmra.mxu1 %v387_v33 }
 0x12d   : > { %v894_v34 = vpop.f32.mrf.mxu0 }
 0x12f   : > { %v505_v35 = vpop.f32.mrf.mxu0 }
 0x13f   : > { %v897_v36 = vpop.f32.mrf.mxu0 }
 0x141   : > { %v515_v37 = vpop.f32.mrf.mxu0 }
 0x145   : > { %v900_v38 = vpop.f32.mrf.mxu0 }
 0x147   : > { %v525_v39 = vpop.f32.mrf.mxu0 }
 0x149   : > { %v903_v43 = vpop.f32.mrf.mxu0 }
 0x14a   : > { %v941_v46 = vpop.f32.mrf.mxu1 }
 0x14b   : > { %v626_v48 = vadd.f32 %v941_v46, %v897_v36  ;;  %v535_v49 = vpop.f32.mrf.mxu0 }
 0x14c   : > { %v620_v52 = vpop.f32.mrf.mxu1 }
 0x14d   : > { %v670_v55 = vadd.f32 %v662_v44, %v626_v48  ;;  %v621_v56 = vadd.f32 %v620_v52, %v515_v37 }
 0x14e   : > { %v938_v57 = vpop.f32.mrf.mxu0  ;;  %v944_v60 = vpop.f32.mrf.mxu1 }
 0x14f   : > { %v616_v59 = vadd.f32 %v938_v57, %v894_v34  ;;  %678 = vst [vmem:[%s1460_s15 + $0x18] sm:$0xff] %v670_v55  ;;  %v669_v63 = vadd.f32 %v661_v50, %v621_v56  ;;  %v636_v0 = vadd.f32 %v944_v60, %v900_v38 }
 0x150   : > { %v610_v1 = vpop.f32.mrf.mxu0  ;;  %v630_v5 = vpop.f32.mrf.mxu1 }
 0x151   : > { %v668_v3 = vadd.f32 %v660_v53, %v616_v59  ;;  %v611_v4 = vadd.f32 %v610_v1, %v505_v35  ;;  %677 = vst [vmem:[%s1460_s15 + $0x10] sm:$0xff] %v669_v63  ;;  %v672_v7 = vadd.f32 %v664_v58, %v636_v0  ;;  %v631_v8 = vadd.f32 %v630_v5, %v525_v39 }
 0x152   : > { %v947_v11 = vpop.f32.mrf.mxu1 }
 0x153   : > { %676 = vst [vmem:[%s1460_s15 + $0x8] sm:$0xff] %v668_v3  ;;  %v667_v10 = vadd.f32 %v659_v61, %v611_v4  ;;  %680 = vst [vmem:[%s1460_s15 + $0x28] sm:$0xff] %v672_v7  ;;  %v671_v12 = vadd.f32 %v663_v2, %v631_v8  ;;  %v646_v13 = vadd.f32 %v947_v11, %v903_v43 }
 0x154   : > { %v640_v15 = vpop.f32.mrf.mxu1 }
 0x155   : > { %675 = vst [vmem:[%s1460_s15] sm:$0xff] %v667_v10  ;;  %679 = vst [vmem:[%s1460_s15 + $0x20] sm:$0xff] %v671_v12  ;;  %v674_v16 = vadd.f32 %v666_v9, %v646_v13  ;;  %v641_v17 = vadd.f32 %v640_v15, %v535_v49  ;;  %690 = sbr.rel (!%p1545_p6) target bundleno = 373 (0x175), region = 56 }
 0x157   : > { %682 = vst [vmem:[%s1460_s15 + $0x38] sm:$0xff] %v674_v16  ;;  %v673_v18 = vadd.f32 %v665_v14, %v641_v17 }
 0x159   : > { %681 = vst [vmem:[%s1460_s15 + $0x30] sm:$0xff] %v673_v18 }
 0x15a   : > { %s1557_s21 = smov (!%p693_p7, %s692_s21), 8 }
 0x15b   : > { %s1475_s22 = sshll.u32 %s1557_s21, 7 }
 0x15c   : > { %s697_s20 = ssub.s32 1024, %s1475_s22 }
 0x15d   : > { %698 = vsyncadd %s684_s13, %s697_s20  ;;  %p845_p8 = scmp.ne.s32.totalorder %s1475_s22, 0  ;;  %s853_s17 = sshll.u32 %s1216_s0, 10 }
 0x15e   : > { %s1485_s18 = scalar_lea.hbm %s1539_s6, %s853_s17  ;;  %s703_s29 = sshll.u32 %s1460_s15, 4  ;;  %s1488_s29 = int_to_ptr.vmem [resolvable:$true] %s703_s29 }
 0x15f   : > { %s1078_s27 = scalar_lea.vmem %s1488_s29, %s1475_s22  ;;  %s1154_s9 = smov [#allocation8]  }
 0x160   : > { %p1079_p12 = scmp.ne.s32.totalorder %s1488_s29, %s1078_s27  ;;  %s1082_s30 = sshll.u32 %s1154_s9, 4  ;;  %s1083_s30 = int_to_ptr.vmem [resolvable:$false] %s1082_s30 }
 0x161   : > { %s1084_s0 = scalar_lea.vmem %s1083_s30, 2048  ;;  %p1085_p3 = scmp.lt.s32.totalorder %s1488_s29, %s1083_s30 }
 0x162   : > { %p1080_p0 = pnand %p1079_p12, %p845_p8  ;;  %p1086_p9 = scmp.lt.s32.totalorder %s1084_s0, %s1078_s27 }
 0x164   : > { %p1081_p1 = pneg %p1080_p0  ;;  %p1087_p10 = por %p1086_p9, %p1085_p3 }
 0x166   : > { %p1088_p11 = pnand %p1087_p10, %p1081_p1 }
 0x168   : > { %1091 = shalt.err (!%p1088_p11)
}
 0x169   : > { %s1092_s14 = scalar_lea.hbm %s1485_s18, %s1475_s22  ;;  %s1096_s15 = scalar_lea.hbm %s1539_s6, 1920 }
 0x16a   : > { %p1093_p13 = scmp.ne.s32.totalorder %s1485_s18, %s1092_s14  ;;  %p1097_p5 = scmp.lt.s32.totalorder %s1485_s18, %s1539_s6 }
 0x16b   : > { %p1098_p6 = scmp.lt.s32.totalorder %s1096_s15, %s1092_s14 }
 0x16c   : > { %p1094_p2 = pnand %p1093_p13, %p845_p8 }
 0x16d   : > { %p1099_p7 = por %p1098_p6, %p1097_p5 }
 0x16e   : > { %p1095_p4 = pneg %p1094_p2 }
 0x170   : > { %p1100_p12 = pnand %p1099_p7, %p1095_p4 }
 0x172   : > { %1103 = shalt.err (!%p1100_p12)
}
 0x173   : > { %s1155_s17 = smov 128   ;;  %s1156_s10 = smov 8  }
 0x174   : > { %709 = dma.vmem_to_hbm [thread:$0]  (%p845_p8), %s1488_s29, %s1475_s22, %s1485_s18, %s684_s13, %s1155_s17, %s1155_s17, %s1156_s10  }
 0x175 PF: > { %s718_s16 = sand.u32 1, %s1134_s23   ;;  %p1546_p0 = scmp.ne.s32.totalorder %s1544_s11, 0 }
 0x176   : > { %p1547_p1 = scmp.ge.s32.totalorder %s1146_s26, 2  ;;  %s719_s27 = scalar_lea.sflag [#allocation5], %s718_s16 }
 0x178   : > { %p984_p3 = pnand %p1547_p1, %p1546_p0 }
 0x17a   : > { %p985_p9 = pneg %p984_p3 }
 0x17c   : > { %1129 = dma.done.wait (%p985_p9), %s719_s27, 1024  }
 0x17d   : > { %1131 = vsyncadd (%p985_p9), %s719_s27, 4294966272  ;;  %p23_p10 = scmp.ge.s32.totalorder %s1220_s28, 4   ;;  %s1548_s23 = smov %s1138_s24 }
 0x17e   : > { %s1549_s24 = smov %s1142_s25  ;;  %s1550_s25 = smov %s1232_s7 }
 0x17f   : > { %s1551_s26 = smov %s1220_s28  ;;  %25 = sbr.rel (!%p23_p10) target bundleno = 9 (0x9), region = 105 }
 0x184   :  { %724 = vsyncpa [#allocation4], 1 }
 0x185   :  { %726 = vsyncpa [#allocation4 + $0x1], 1 }
 0x186   :  { %727 = vsyncpa [#allocation7], 1 }
 0x187   :  { %729 = vsyncpa [#allocation7 + $0x1], 1 }
 0x188   :  { %730 = vsyncpa [#allocation5], 1 }
 0x189   :  { %732 = vsyncpa [#allocation5 + $0x1], 1 }

</bundles_post_ra>
